<compile_context>
chip_gen: v7x
topology: tpu7x:2x2x1
jax: 0.10.0
libtpu: 0.0.40
codegen_flags: <defaults>
</compile_context>

<pallas_src>
import jax
import jax.numpy as jnp
from jax.experimental import pallas as pl
from jax.experimental.pallas import tpu as pltpu


def _round_up(x, m):
    return ((x + m - 1) // m) * m


def _cnn_block_kernel(p_ref, w_ref, scale_ref, shift_ref, o_ref, acc_ref):
    """Fused (patches @ W) + BatchNorm(eval) affine + LeakyReLU(0.1).

    Grid = (M tiles, Cout tiles, K tiles). Last axis is the reduction over the
    im2col contraction dim; partial products accumulate into an f32 VMEM scratch.
    """
    k = pl.program_id(2)

    @pl.when(k == 0)
    def _():
        acc_ref[...] = jnp.zeros_like(acc_ref)

    acc_ref[...] += jnp.dot(p_ref[...], w_ref[...],
                            preferred_element_type=jnp.float32)

    @pl.when(k == pl.num_programs(2) - 1)
    def _():
        z = acc_ref[...] * scale_ref[...] + shift_ref[...]   # per-channel affine (f32)
        o_ref[...] = jnp.where(z > 0, z, 0.1 * z).astype(o_ref.dtype)


def cnn_block_forward(x_nchw, weight, bn_gamma, bn_beta, bn_mean, bn_var,
                      *, padding=1, bn_eps=1e-5,
                      tile_m=512, tile_n=None, tile_k=None):
    """Conv2d(stride=1, bias=False) -> BatchNorm2d(eval) -> LeakyReLU(0.1)."""
    N, Cin, H, W = x_nchw.shape
    Cout, _, KH, KW = weight.shape
    out_dtype = x_nchw.dtype
    out_itemsize = jnp.dtype(out_dtype).itemsize

    # ---- glue: NCHW -> NHWC; cast to bf16 BEFORE im2col so the inflated patch
    # matrix written/read through HBM is half-width ----
    x = jnp.transpose(x_nchw, (0, 2, 3, 1)).astype(jnp.bfloat16)
    xp = jnp.pad(x, ((0, 0), (padding, padding), (padding, padding), (0, 0)))
    Ho = H + 2 * padding - KH + 1
    Wo = W + 2 * padding - KW + 1

    # TODO(synk): fuse im2col into the kernel (per-tap Element-offset BlockSpecs on a
    # (dy, dx) reduction axis) so the KH*KW-inflated patch matrix never touches HBM.
    cols = []
    for dy in range(KH):
        for dx in range(KW):
            cols.append(xp[:, dy:dy + Ho, dx:dx + Wo, :])
    # patch element order: (kh, kw, c_in)
    patches = jnp.concatenate(cols, axis=-1).reshape(N * Ho * Wo, KH * KW * Cin)

    # weight (Cout, Cin, KH, KW) -> (KH*KW*Cin, Cout), matching the patch ordering
    w2d = jnp.transpose(weight, (2, 3, 1, 0)).reshape(KH * KW * Cin, Cout)
    w2d = w2d.astype(jnp.bfloat16)

    inv_std = jax.lax.rsqrt(bn_var.astype(jnp.float32) + bn_eps)
    scale = (bn_gamma * inv_std).astype(jnp.float32)
    shift = (bn_beta - bn_mean * bn_gamma * inv_std).astype(jnp.float32)

    M = N * Ho * Wo
    P = KH * KW * Cin

    # ---- lane-dense output: pad Cout to a multiple of 128 and tile it ----
    Cout_p = _round_up(Cout, 128)
    if tile_n is None:
        tile_n = 256 if Cout_p % 256 == 0 else 128
    w2d = jnp.pad(w2d, ((0, 0), (0, Cout_p - Cout)))
    scale = jnp.pad(scale, (0, Cout_p - Cout)).reshape(1, Cout_p)
    shift = jnp.pad(shift, (0, Cout_p - Cout)).reshape(1, Cout_p)

    # ---- K (contraction) tiling: only tile when P is large (deep layers) ----
    if tile_k is None:
        tile_k = P if P <= 2048 else 512
    Kp = _round_up(P, tile_k)
    if Kp != P:
        patches = jnp.pad(patches, ((0, 0), (0, Kp - P)))   # zero K-pad: adds nothing
        w2d = jnp.pad(w2d, ((0, Kp - P), (0, 0)))
    nk = Kp // tile_k

    # ---- M tiling (pad rows only if not already tile-aligned) ----
    tile_m = min(tile_m, _round_up(M, 8))
    Mp = _round_up(M, tile_m)
    if Mp != M:
        patches = jnp.pad(patches, ((0, Mp - M), (0, 0)))

    grid = (Mp // tile_m, Cout_p // tile_n, nk)

    # VMEM budget: double-buffered pipelined tiles + f32 accumulator scratch.
    vmem_bytes = (2 * (tile_m * tile_k * 2          # bf16 patch tile
                       + tile_k * tile_n * 2        # bf16 weight tile
                       + 2 * tile_n * 4             # scale + shift
                       + tile_m * tile_n * out_itemsize)   # output tile
                  + tile_m * tile_n * 4)            # accumulator scratch
    vmem_limit = min(max(int(vmem_bytes * 1.5) + (4 << 20), 16 << 20), 64 << 20)

    out = pl.pallas_call(
        _cnn_block_kernel,
        out_shape=jax.ShapeDtypeStruct((Mp, Cout_p), out_dtype),
        grid_spec=pltpu.PrefetchScalarGridSpec(
            num_scalar_prefetch=0,
            grid=grid,
            in_specs=[
                pl.BlockSpec((tile_m, tile_k), lambda i, j, k: (i, k)),  # patch rows
                pl.BlockSpec((tile_k, tile_n), lambda i, j, k: (k, j)),  # weight tile
                pl.BlockSpec((1, tile_n), lambda i, j, k: (0, j)),       # BN scale
                pl.BlockSpec((1, tile_n), lambda i, j, k: (0, j)),       # BN shift
            ],
            out_specs=pl.BlockSpec((tile_m, tile_n), lambda i, j, k: (i, j)),
            scratch_shapes=[pltpu.VMEM((tile_m, tile_n), jnp.float32)],
        ),
        compiler_params=pltpu.CompilerParams(
            dimension_semantics=("parallel", "parallel", "arbitrary"),
            vmem_limit_bytes=vmem_limit,
        ),
    )(patches, w2d, scale, shift)

    out = out[:M, :Cout].reshape(N, Ho, Wo, Cout)
    return jnp.transpose(out, (0, 3, 1, 2))                  # back to NCHW


def _reference(x, weight, gamma, beta, mean, var, eps=1e-5):
    z = jax.lax.conv_general_dilated(
        x, weight, window_strides=(1, 1), padding=((1, 1), (1, 1)),
        dimension_numbers=("NCHW", "OIHW", "NCHW"))
    inv_std = jax.lax.rsqrt(var + eps)
    z = (z - mean[None, :, None, None]) * (gamma * inv_std)[None, :, None, None] \
        + beta[None, :, None, None]
    return jnp.where(z > 0, z, 0.1 * z)


if __name__ == "__main__":
    N, Cin, H, W = 2, 4, 16, 16
    Cout, K = 8, 3

    key = jax.random.PRNGKey(0)
    k1, k2, k3, k4, k5, k6 = jax.random.split(key, 6)
    x = jax.random.normal(k1, (N, Cin, H, W), jnp.float32)
    weight = jax.random.normal(k2, (Cout, Cin, K, K), jnp.float32) * 0.1
    bn_gamma = jax.random.uniform(k3, (Cout,), jnp.float32, 0.5, 1.5)
    bn_beta = jax.random.normal(k4, (Cout,), jnp.float32) * 0.1
    bn_mean = jax.random.normal(k5, (Cout,), jnp.float32) * 0.1
    bn_var = jax.random.uniform(k6, (Cout,), jnp.float32, 0.5, 1.5)

    out = cnn_block_forward(x, weight, bn_gamma, bn_beta, bn_mean, bn_var)
    out = jax.block_until_ready(out)

    ref = _reference(x, weight, bn_gamma, bn_beta, bn_mean, bn_var)
    assert out.shape == (N, Cout, H, W)
    # bf16 matmul operands with f32 accumulation -> looser tolerance vs f32 reference
    assert jnp.allclose(out, ref, rtol=3e-2, atol=3e-2), "mismatch vs JAX reference"

    print("KERNEL_OK")
</pallas_src>

<mosaic_0001>
module attributes {stable_mosaic.version = 11 : i64} {
  func.func @_cnn_block_kernel(%arg0: i32, %arg1: i32, %arg2: i32, %arg3: memref<512x36xbf16, #tpu.memory_space<vmem>>, %arg4: memref<36x128xbf16, #tpu.memory_space<vmem>>, %arg5: memref<1x128xf32, #tpu.memory_space<vmem>>, %arg6: memref<1x128xf32, #tpu.memory_space<vmem>>, %arg7: memref<512x128xf32, #tpu.memory_space<vmem>>, %arg8: memref<512x128xf32, #tpu.memory_space<vmem>>) attributes {dimension_semantics = [#tpu.dimension_semantics<parallel>, #tpu.dimension_semantics<parallel>, #tpu.dimension_semantics<arbitrary>], iteration_bounds = array<i64: 1, 1, 1>, scalar_prefetch = 0 : i64, scratch_operands = 1 : i64, tpu.core_type = #tpu.core_type<tc>, window_params = [{transform_indices = @transform_0, window_bounds = array<i64: 512, 36>}, {transform_indices = @transform_1, window_bounds = array<i64: 36, 128>}, {transform_indices = @transform_2, window_bounds = array<i64: 1, 128>}, {transform_indices = @transform_3, window_bounds = array<i64: 1, 128>}, {transform_indices = @transform_4, window_bounds = array<i64: 512, 128>}]} {
    %c0_i32 = arith.constant 0 : i32
    %0 = arith.cmpi eq, %arg2, %c0_i32 : i32
    %1 = arith.extui %0 : i1 to i32
    %c0_i32_0 = arith.constant 0 : i32
    %2 = arith.cmpi ne, %1, %c0_i32_0 : i32
    scf.if %2 {
      %cst_10 = arith.constant 0.000000e+00 : f32
      %12 = vector.broadcast %cst_10 : f32 to vector<512x128xf32>
      %c0_11 = arith.constant 0 : index
      %c0_12 = arith.constant 0 : index
      %13 = vector.load %arg8[%c0_11, %c0_12] : memref<512x128xf32, #tpu.memory_space<vmem>>, vector<512x128xf32>
      tpu.vector_store %arg8[%c0_11, %c0_12], %12 {strides = array<i32>} : memref<512x128xf32, #tpu.memory_space<vmem>>, vector<512x128xf32>,
    } else {
    }
    %c0 = arith.constant 0 : index
    %c0_1 = arith.constant 0 : index
    %3 = vector.load %arg8[%c0, %c0_1] : memref<512x128xf32, #tpu.memory_space<vmem>>, vector<512x128xf32>
    %c0_2 = arith.constant 0 : index
    %c0_3 = arith.constant 0 : index
    %4 = vector.load %arg3[%c0_2, %c0_3] : memref<512x36xbf16, #tpu.memory_space<vmem>>, vector<512x36xbf16>
    %c0_4 = arith.constant 0 : index
    %c0_5 = arith.constant 0 : index
    %5 = vector.load %arg4[%c0_4, %c0_5] : memref<36x128xbf16, #tpu.memory_space<vmem>>, vector<36x128xbf16>
    %cst = arith.constant dense<0.000000e+00> : vector<512x128xf32>
    %6 = tpu.matmul %4, %5, %cst {dimension_numbers = #tpu.dot_dimension_numbers<[1], [0], [0], [1], [0, 0, 1, 1], [], []>} : vector<512x36xbf16>, vector<36x128xbf16>, vector<512x128xf32> -> vector<512x128xf32>
    %7 = arith.addf %3, %6 : vector<512x128xf32>
    %c0_6 = arith.constant 0 : index
    %c0_7 = arith.constant 0 : index
    %8 = vector.load %arg8[%c0_6, %c0_7] : memref<512x128xf32, #tpu.memory_space<vmem>>, vector<512x128xf32>
    tpu.vector_store %arg8[%c0_6, %c0_7], %7 {strides = array<i32>} : memref<512x128xf32, #tpu.memory_space<vmem>>, vector<512x128xf32>,
    %c0_i32_8 = arith.constant 0 : i32
    %9 = arith.cmpi eq, %arg2, %c0_i32_8 : i32
    %10 = arith.extui %9 : i1 to i32
    %c0_i32_9 = arith.constant 0 : i32
    %11 = arith.cmpi ne, %10, %c0_i32_9 : i32
    scf.if %11 {
      %c0_10 = arith.constant 0 : index
      %c0_11 = arith.constant 0 : index
      %12 = vector.load %arg8[%c0_10, %c0_11] : memref<512x128xf32, #tpu.memory_space<vmem>>, vector<512x128xf32>
      %c0_12 = arith.constant 0 : index
      %c0_13 = arith.constant 0 : index
      %13 = vector.load %arg5[%c0_12, %c0_13] : memref<1x128xf32, #tpu.memory_space<vmem>>, vector<1x128xf32>
      %14 = vector.broadcast %13 : vector<1x128xf32> to vector<512x128xf32>
      %15 = arith.mulf %12, %14 : vector<512x128xf32>
      %c0_14 = arith.constant 0 : index
      %c0_15 = arith.constant 0 : index
      %16 = vector.load %arg6[%c0_14, %c0_15] : memref<1x128xf32, #tpu.memory_space<vmem>>, vector<1x128xf32>
      %17 = vector.broadcast %16 : vector<1x128xf32> to vector<512x128xf32>
      %18 = arith.addf %15, %17 : vector<512x128xf32>
      %cst_16 = arith.constant 0.000000e+00 : f32
      %19 = vector.broadcast %cst_16 : f32 to vector<512x128xf32>
      %20 = arith.cmpf ogt, %18, %19 : vector<512x128xf32>
      %cst_17 = arith.constant 1.000000e-01 : f32
      %21 = vector.broadcast %cst_17 : f32 to vector<512x128xf32>
      %22 = arith.mulf %21, %18 : vector<512x128xf32>
      %23 = arith.select %20, %18, %22 : vector<512x128xi1>, vector<512x128xf32>
      %c0_18 = arith.constant 0 : index
      %c0_19 = arith.constant 0 : index
      %24 = vector.load %arg7[%c0_18, %c0_19] : memref<512x128xf32, #tpu.memory_space<vmem>>, vector<512x128xf32>
      tpu.vector_store %arg7[%c0_18, %c0_19], %23 {strides = array<i32>} : memref<512x128xf32, #tpu.memory_space<vmem>>, vector<512x128xf32>,
    } else {
    }
    return
  }
  func.func @transform_0(%arg0: i32, %arg1: i32, %arg2: i32) -> (i32, i32) {
    %c0_i32 = arith.constant 0 : i32
    return %arg0, %arg2 : i32, i32
  }
  func.func @transform_1(%arg0: i32, %arg1: i32, %arg2: i32) -> (i32, i32) {
    %c0_i32 = arith.constant 0 : i32
    return %arg2, %arg1 : i32, i32
  }
  func.func @transform_2(%arg0: i32, %arg1: i32, %arg2: i32) -> (i32, i32) {
    %c0_i32 = arith.constant 0 : i32
    %c0_i32_0 = arith.constant 0 : i32
    return %c0_i32, %arg1 : i32, i32
  }
  func.func @transform_3(%arg0: i32, %arg1: i32, %arg2: i32) -> (i32, i32) {
    %c0_i32 = arith.constant 0 : i32
    %c0_i32_0 = arith.constant 0 : i32
    return %c0_i32, %arg1 : i32, i32
  }
  func.func @transform_4(%arg0: i32, %arg1: i32, %arg2: i32) -> (i32, i32) {
    %c0_i32 = arith.constant 0 : i32
    return %arg0, %arg1 : i32, i32
  }
}

</mosaic_0001>

<bundles_post_ra>
// kernel: tpu_custom_call.1
= control target key start
LH: loop header
LB: loop body
LE: loop exit
PB: predicated region body
PF: predicated region fallthrough
CT: control target
= control target key end

     0   :  { %vm395_vm0 = vcmask 293888   ;;  %vm492_vm1 = vcmask 1041408   ;;  %s1983_s0 = inlined_call_operand.vmem [shape: bf16[512,36], index: 0, kind: input, shape index: {}]   ;;  %s1984_s1 = inlined_call_operand.vmem [shape: bf16[36,128], index: 1, kind: input, shape index: {}]   ;;  %s1985_s2 = inlined_call_operand.vmem [shape: f32[1,128], index: 2, kind: input, shape index: {}]   ;;  %s1986_s3 = inlined_call_operand.vmem [shape: f32[1,128], index: 3, kind: input, shape index: {}]   ;;  %s1987_s4 = inlined_call_operand.hbm [shape: f32[512,128], index: 4, kind: output, shape index: {}]  }
   0x1   :  { %v1579_v0 = vld [vmem:[%s1984_s1] sm:$0xff]   ;;  %v1580_v1 = vld [vmem:[%s1984_s1 + $0x8] sm:$0xff]   ;;  %v1581_v2 = vld [vmem:[%s1984_s1 + $0x10] ss:$0 sps:$4 sm:$0x33]  }
   0x2   :  { %1498 = vmatprep.subr.bf16.mxu0 %v1579_v0  ;;  %1568 = vmatprep.subr.bf16.mxu1 %v1579_v0  ;;  %v1582_v3 = vld [vmem:[%s1983_s0] sm:$0xff]   ;;  %v494_v5 = vsel %vm492_vm1, %v1581_v2, 0  ;;  %v1584_v6 = vld [vmem:[%s1983_s0 + $0x8] sm:$0xff]   ;;  %v1586_v8 = vld [vmem:[%s1983_s0 + $0x10] sm:$0xff]  }
   0x3   :  { %1499 = vmatpush3.bf16.msra.mxu0 %v1579_v0  ;;  %1571 = vmatpush3.bf16.msra.mxu1 %v1579_v0  ;;  %v1583_v4 = vld [vmem:[%s1983_s0 + $0x80] sm:$0xff]   ;;  %v1585_v7 = vld [vmem:[%s1983_s0 + $0x88] sm:$0xff]   ;;  %v1587_v9 = vld [vmem:[%s1983_s0 + $0x90] sm:$0xff]  }
   0x4   :  { %1500 = vmatprep.subr.bf16.mxu0 %v1580_v1  ;;  %1569 = vmatprep.subr.bf16.mxu1 %v1580_v1  ;;  %v1588_v10 = vld [vmem:[%s1983_s0 + $0x18] sm:$0xff]   ;;  %v1590_v12 = vld [vmem:[%s1983_s0 + $0x20] sm:$0xff]   ;;  %v1592_v14 = vld [vmem:[%s1983_s0 + $0x28] sm:$0xff]  }
   0x5   :  { %1504 = vmatprep.mubr.msk.bf16.mxu0 %vm395_vm0, %v1582_v3  ;;  %1536 = vmatprep.mubr.msk.bf16.mxu1 %vm395_vm0, %v1583_v4  ;;  %v1589_v11 = vld [vmem:[%s1983_s0 + $0x98] sm:$0xff]   ;;  %v1591_v13 = vld [vmem:[%s1983_s0 + $0xa0] sm:$0xff]   ;;  %v1593_v15 = vld [vmem:[%s1983_s0 + $0xa8] sm:$0xff]  }
   0x6   :  { %v1594_v16 = vld [vmem:[%s1983_s0 + $0x30] sm:$0xff]   ;;  %v1596_v18 = vld [vmem:[%s1983_s0 + $0x38] sm:$0xff]  }
   0x7   :  { %1501 = vmatpush3.bf16.msra.mxu0 %v1580_v1  ;;  %1572 = vmatpush3.bf16.msra.mxu1 %v1580_v1  ;;  %v1595_v17 = vld [vmem:[%s1983_s0 + $0xb0] sm:$0xff]   ;;  %v1597_v19 = vld [vmem:[%s1983_s0 + $0xb8] sm:$0xff]  }
   0x8   :  { %1574 = vmatprep.subr.msk.bf16.mxu0 %vm492_vm1, %v1581_v2  ;;  %1575 = vmatprep.subr.msk.bf16.mxu1 %vm492_vm1, %v1581_v2 }
   0xb   :  { %1503 = vmatpush3.bf16.msra.mxu0 %v494_v5  ;;  %1573 = vmatpush3.bf16.msra.mxu1 %v494_v5 }
   0xe   :  { %1505 = vmatmul.mubr.msk.bf16.vlgmr.msra.gmra.mrb[0].mxu0 %vm395_vm0, %v1584_v6  ;;  %1537 = vmatmul.mubr.msk.bf16.vlgmr.msra.gmra.mrb[0].mxu1 %vm395_vm0, %v1585_v7 }
   0xf   :  { %1508 = vmatprep.mubr.msk.bf16.mxu0 %vm395_vm0, %v1586_v8  ;;  %1540 = vmatprep.mubr.msk.bf16.mxu1 %vm395_vm0, %v1587_v9 }
  0x16   :  { %1509 = vmatmul.mubr.msk.bf16.gmra.mrb[4].mxu0 %vm395_vm0, %v1588_v10  ;;  %1541 = vmatmul.mubr.msk.bf16.gmra.mrb[4].mxu1 %vm395_vm0, %v1589_v11 }
  0x17   :  { %1512 = vmatprep.mubr.msk.bf16.mxu0 %vm395_vm0, %v1590_v12  ;;  %1544 = vmatprep.mubr.msk.bf16.mxu1 %vm395_vm0, %v1591_v13 }
  0x1e   :  { %1513 = vmatmul.mubr.msk.bf16.gmra.mrb[8].mxu0 %vm395_vm0, %v1592_v14  ;;  %1545 = vmatmul.mubr.msk.bf16.gmra.mrb[8].mxu1 %vm395_vm0, %v1593_v15 }
  0x1f   :  { %1516 = vmatprep.mubr.msk.bf16.mxu0 %vm395_vm0, %v1594_v16  ;;  %1548 = vmatprep.mubr.msk.bf16.mxu1 %vm395_vm0, %v1595_v17 }
  0x20   :  { %9 = vsyncpa [#allocation4], 0  ;;  %v1598_v20 = vld [vmem:[%s1983_s0 + $0x40] sm:$0xff]   ;;  %v1600_v22 = vld [vmem:[%s1983_s0 + $0x48] sm:$0xff]  }
  0x21   :  { %v1599_v21 = vld [vmem:[%s1983_s0 + $0xc0] sm:$0xff]   ;;  %v1601_v23 = vld [vmem:[%s1983_s0 + $0xc8] sm:$0xff]   ;;  %v1602_v24 = vld [vmem:[%s1983_s0 + $0x50] sm:$0xff]  }
  0x22   :  { %v1603_v25 = vld [vmem:[%s1983_s0 + $0xd0] sm:$0xff]   ;;  %v1604_v26 = vld [vmem:[%s1983_s0 + $0x58] sm:$0xff]   ;;  %v1606_v28 = vld [vmem:[%s1983_s0 + $0x60] sm:$0xff]  }
  0x23   :  { %v1605_v27 = vld [vmem:[%s1983_s0 + $0xd8] sm:$0xff]   ;;  %v1607_v29 = vld [vmem:[%s1983_s0 + $0xe0] sm:$0xff]   ;;  %v1608_v30 = vld [vmem:[%s1983_s0 + $0x68] sm:$0xff]  }
  0x24   :  { %v1609_v31 = vld [vmem:[%s1983_s0 + $0xe8] sm:$0xff]   ;;  %v1610_v32 = vld [vmem:[%s1983_s0 + $0x70] sm:$0xff]   ;;  %v1612_v34 = vld [vmem:[%s1983_s0 + $0x78] sm:$0xff]  }
  0x25   :  { %v1611_v33 = vld [vmem:[%s1983_s0 + $0xf0] sm:$0xff]   ;;  %v1613_v35 = vld [vmem:[%s1983_s0 + $0xf8] sm:$0xff]   ;;  %v1806_v36 = vld [vmem:[%s1985_s2] ss:$0 sm:$0xff]  ;;  %s1638_s0 = smov [#allocation3]  }
  0x26   :  { %1517 = vmatmul.mubr.msk.bf16.gmra.mrb[12].mxu0 %vm395_vm0, %v1596_v18  ;;  %1549 = vmatmul.mubr.msk.bf16.gmra.mrb[12].mxu1 %vm395_vm0, %v1597_v19  ;;  %v1811_v38 = vld [vmem:[%s1986_s3] ss:$0 sm:$0xff]  ;;  %s1383_s2 = sshll.u32 %s1638_s0, 4  ;;  %s1384_s2 = int_to_ptr.vmem [resolvable:$true] %s1383_s2 }
  0x27   :  { %1520 = vmatprep.mubr.msk.bf16.mxu0 %vm395_vm0, %v1598_v20  ;;  %1552 = vmatprep.mubr.msk.bf16.mxu1 %vm395_vm0, %v1599_v21  ;;  %s1614_s3 = scalar_lea.vmem %s1384_s2, 8192  ;;  %p1619_p1 = scmp.lt.s32.totalorder %s1384_s2, %s1384_s2 }
  0x28   :  { %p1615_p0 = scmp.ne.s32.totalorder %s1384_s2, %s1614_s3  ;;  %p1620_p2 = scmp.lt.s32.totalorder %s1614_s3, %s1614_s3 }
  0x2a   :  { %p1621_p3 = por %p1620_p2, %p1619_p1 }
  0x2c   :  { %p1622_p4 = pnand %p1621_p3, %p1615_p0 }
  0x2e   :  { %1521 = vmatmul.mubr.msk.bf16.gmra.mrb[16].mxu0 %vm395_vm0, %v1600_v22  ;;  %1553 = vmatmul.mubr.msk.bf16.gmra.mrb[16].mxu1 %vm395_vm0, %v1601_v23 }
  0x2f   :  { %1524 = vmatprep.mubr.msk.bf16.mxu0 %vm395_vm0, %v1602_v24  ;;  %1556 = vmatprep.mubr.msk.bf16.mxu1 %vm395_vm0, %v1603_v25 }
  0x36   :  { %1525 = vmatmul.mubr.msk.bf16.gmra.mrb[20].mxu0 %vm395_vm0, %v1604_v26  ;;  %1557 = vmatmul.mubr.msk.bf16.gmra.mrb[20].mxu1 %vm395_vm0, %v1605_v27 }
  0x37   :  { %1528 = vmatprep.mubr.msk.bf16.mxu0 %vm395_vm0, %v1606_v28  ;;  %1560 = vmatprep.mubr.msk.bf16.mxu1 %vm395_vm0, %v1607_v29 }
  0x3e   :  { %1529 = vmatmul.mubr.msk.bf16.gmra.mrb[24].mxu0 %vm395_vm0, %v1608_v30  ;;  %1561 = vmatmul.mubr.msk.bf16.gmra.mrb[24].mxu1 %vm395_vm0, %v1609_v31 }
  0x3f   :  { %1532 = vmatprep.mubr.msk.bf16.mxu0 %vm395_vm0, %v1610_v32  ;;  %1564 = vmatprep.mubr.msk.bf16.mxu1 %vm395_vm0, %v1611_v33 }
  0x46   :  { %1533 = vmatmul.mubr.msk.bf16.gmra.mrb[28].mxu0 %vm395_vm0, %v1612_v34  ;;  %1565 = vmatmul.mubr.msk.bf16.gmra.mrb[28].mxu1 %vm395_vm0, %v1613_v35 }
  0xe1   :  { %v1506_v37 = vpop.f32.mrb[0].mxu0  ;;  %v1538_v39 = vpop.f32.mrb[0].mxu1 }
  0xe2   :  { %v989_v40 = vmul.f32 %v1506_v37, %v1806_v36  ;;  %v1021_v41 = vmul.f32 %v1538_v39, %v1806_v36  ;;  %v530_v42 = vpop.f32.mrb[1].mxu0  ;;  %v658_v43 = vpop.f32.mrb[1].mxu1 }
  0xe3   :  { %v987_v44 = vmul.f32 %v1806_v36, %v530_v42  ;;  %v1019_v45 = vmul.f32 %v1806_v36, %v658_v43  ;;  %v1507_v46 = vpop.f32.mrb[2].mxu0  ;;  %v1539_v47 = vpop.f32.mrb[2].mxu1 }
  0xe4   :  { %v1060_v48 = vadd.f32 %v1811_v38, %v989_v40  ;;  %v1092_v49 = vadd.f32 %v1811_v38, %v1021_v41  ;;  %v990_v50 = vmul.f32 %v1507_v46, %v1806_v36  ;;  %v1022_v51 = vmul.f32 %v1539_v47, %v1806_v36  ;;  %v533_v52 = vpop.f32.mrb[3].mxu0  ;;  %v661_v53 = vpop.f32.mrb[3].mxu1 }
  0xe5   :  { %v1058_v54 = vadd.f32 %v1811_v38, %v987_v44  ;;  %v1090_v55 = vadd.f32 %v1811_v38, %v1019_v45  ;;  %v988_v56 = vmul.f32 %v1806_v36, %v533_v52  ;;  %v1020_v57 = vmul.f32 %v1806_v36, %v661_v53 }
  0xe6   :  { %vm1124_vm2 = vcmp.gt.f32.partialorder %v1060_v48, 0.0  ;;  %v1188_v58 = vmul.f32 0.1, %v1060_v48  ;;  %vm1156_vm3 = vcmp.gt.f32.partialorder %v1092_v49, 0.0  ;;  %v1220_v59 = vmul.f32 0.1, %v1092_v49 }
  0xe7   :  { %vm1122_vm4 = vcmp.gt.f32.partialorder %v1058_v54, 0.0  ;;  %v1186_v60 = vmul.f32 0.1, %v1058_v54  ;;  %vm1154_vm5 = vcmp.gt.f32.partialorder %v1090_v55, 0.0  ;;  %v1218_v61 = vmul.f32 0.1, %v1090_v55 }
  0xe8   :  { %v1252_v62 = vsel %vm1124_vm2, %v1060_v48, %v1188_v58  ;;  %v1284_v63 = vsel %vm1156_vm3, %v1092_v49, %v1220_v59  ;;  %v1061_v0 = vadd.f32 %v1811_v38, %v990_v50  ;;  %v1093_v1 = vadd.f32 %v1811_v38, %v1022_v51 }
  0xe9   :  { %1316 = vst [vmem:[#allocation3 + $0x10] sm:$0xff] %v1252_v62  ;;  %1348 = vst [vmem:[#allocation3 + $0x110] sm:$0xff] %v1284_v63  ;;  %v1250_v2 = vsel %vm1122_vm4, %v1058_v54, %v1186_v60  ;;  %v1282_v3 = vsel %vm1154_vm5, %v1090_v55, %v1218_v61  ;;  %v1059_v4 = vadd.f32 %v1811_v38, %v988_v56  ;;  %v1510_v6 = vpop.f32.mrb[4].mxu0  ;;  %v1542_v7 = vpop.f32.mrb[4].mxu1 }
  0xea   :  { %v1091_v5 = vadd.f32 %v1811_v38, %v1020_v57  ;;  %1314 = vst [vmem:[#allocation3] sm:$0xff] %v1250_v2  ;;  %1346 = vst [vmem:[#allocation3 + $0x100] sm:$0xff] %v1282_v3  ;;  %vm1125_vm6 = vcmp.gt.f32.partialorder %v1061_v0, 0.0  ;;  %v1189_v8 = vmul.f32 0.1, %v1061_v0  ;;  %vm1157_vm7 = vcmp.gt.f32.partialorder %v1093_v1, 0.0 }
  0xeb   :  { %v1221_v9 = vmul.f32 0.1, %v1093_v1  ;;  %vm1123_vm8 = vcmp.gt.f32.partialorder %v1059_v4, 0.0  ;;  %v1187_v10 = vmul.f32 0.1, %v1059_v4  ;;  %v993_v14 = vmul.f32 %v1510_v6, %v1806_v36  ;;  %v546_v16 = vpop.f32.mrb[5].mxu0 }
  0xec   :  { %vm1155_vm9 = vcmp.gt.f32.partialorder %v1091_v5, 0.0  ;;  %v1219_v11 = vmul.f32 0.1, %v1091_v5  ;;  %v1253_v12 = vsel %vm1125_vm6, %v1061_v0, %v1189_v8  ;;  %v1025_v15 = vmul.f32 %v1542_v7, %v1806_v36  ;;  %v674_v17 = vpop.f32.mrb[5].mxu1  ;;  %v1511_v22 = vpop.f32.mrb[6].mxu0 }
  0xed   :  { %v1285_v13 = vsel %vm1157_vm7, %v1093_v1, %v1221_v9  ;;  %1317 = vst [vmem:[#allocation3 + $0x18] sm:$0xff] %v1253_v12  ;;  %v1251_v18 = vsel %vm1123_vm8, %v1059_v4, %v1187_v10  ;;  %v991_v20 = vmul.f32 %v1806_v36, %v546_v16  ;;  %v1023_v21 = vmul.f32 %v1806_v36, %v674_v17  ;;  %v1543_v23 = vpop.f32.mrb[6].mxu1  ;;  %v549_v28 = vpop.f32.mrb[7].mxu0 }
  0xee   :  { %1349 = vst [vmem:[#allocation3 + $0x118] sm:$0xff] %v1285_v13  ;;  %v1283_v19 = vsel %vm1155_vm9, %v1091_v5, %v1219_v11  ;;  %1315 = vst [vmem:[#allocation3 + $0x8] sm:$0xff] %v1251_v18  ;;  %v1064_v24 = vadd.f32 %v1811_v38, %v993_v14  ;;  %v1096_v25 = vadd.f32 %v1811_v38, %v1025_v15  ;;  %v677_v29 = vpop.f32.mrb[7].mxu1 }
  0xef   :  { %1347 = vst [vmem:[#allocation3 + $0x108] sm:$0xff] %v1283_v19  ;;  %v994_v26 = vmul.f32 %v1511_v22, %v1806_v36  ;;  %v1026_v27 = vmul.f32 %v1543_v23, %v1806_v36  ;;  %v1062_v30 = vadd.f32 %v1811_v38, %v991_v20  ;;  %v1094_v31 = vadd.f32 %v1811_v38, %v1023_v21 }
  0xf0   :  { %v992_v32 = vmul.f32 %v1806_v36, %v549_v28  ;;  %v1024_v33 = vmul.f32 %v1806_v36, %v677_v29  ;;  %vm1128_vm10 = vcmp.gt.f32.partialorder %v1064_v24, 0.0  ;;  %v1192_v34 = vmul.f32 0.1, %v1064_v24 }
  0xf1   :  { %vm1160_vm11 = vcmp.gt.f32.partialorder %v1096_v25, 0.0  ;;  %v1224_v35 = vmul.f32 0.1, %v1096_v25  ;;  %vm1126_vm12 = vcmp.gt.f32.partialorder %v1062_v30, 0.0  ;;  %v1190_v37 = vmul.f32 0.1, %v1062_v30 }
  0xf2   :  { %vm1158_vm13 = vcmp.gt.f32.partialorder %v1094_v31, 0.0  ;;  %v1222_v39 = vmul.f32 0.1, %v1094_v31  ;;  %v1256_v40 = vsel %vm1128_vm10, %v1064_v24, %v1192_v34  ;;  %v1065_v42 = vadd.f32 %v1811_v38, %v994_v26  ;;  %v1514_v44 = vpop.f32.mrb[8].mxu0  ;;  %v1546_v45 = vpop.f32.mrb[8].mxu1 }
  0xf3   :  { %v1288_v41 = vsel %vm1160_vm11, %v1096_v25, %v1224_v35  ;;  %v1097_v43 = vadd.f32 %v1811_v38, %v1026_v27  ;;  %1320 = vst [vmem:[#allocation3 + $0x30] sm:$0xff] %v1256_v40  ;;  %v1254_v46 = vsel %vm1126_vm12, %v1062_v30, %v1190_v37  ;;  %v1063_v48 = vadd.f32 %v1811_v38, %v992_v32  ;;  %v562_v50 = vpop.f32.mrb[9].mxu0  ;;  %v690_v51 = vpop.f32.mrb[9].mxu1 }
  0xf4   :  { %1352 = vst [vmem:[#allocation3 + $0x130] sm:$0xff] %v1288_v41  ;;  %v1286_v47 = vsel %vm1158_vm13, %v1094_v31, %v1222_v39  ;;  %v1095_v49 = vadd.f32 %v1811_v38, %v1024_v33  ;;  %1318 = vst [vmem:[#allocation3 + $0x20] sm:$0xff] %v1254_v46  ;;  %vm1129_vm14 = vcmp.gt.f32.partialorder %v1065_v42, 0.0  ;;  %v1193_v52 = vmul.f32 0.1, %v1065_v42  ;;  %v1515_v60 = vpop.f32.mrb[10].mxu0 }
  0xf5   :  { %1350 = vst [vmem:[#allocation3 + $0x120] sm:$0xff] %v1286_v47  ;;  %vm1161_vm15 = vcmp.gt.f32.partialorder %v1097_v43, 0.0  ;;  %v1225_v53 = vmul.f32 0.1, %v1097_v43  ;;  %vm1127_vm0 = vcmp.gt.f32.partialorder %v1063_v48, 0.0  ;;  %v997_v58 = vmul.f32 %v1514_v44, %v1806_v36  ;;  %v1547_v61 = vpop.f32.mrb[10].mxu1 }
  0xf6   :  { %v1191_v54 = vmul.f32 0.1, %v1063_v48  ;;  %vm1159_vm1 = vcmp.gt.f32.partialorder %v1095_v49, 0.0  ;;  %v1223_v55 = vmul.f32 0.1, %v1095_v49  ;;  %v1257_v56 = vsel %vm1129_vm14, %v1065_v42, %v1193_v52  ;;  %v565_v2 = vpop.f32.mrb[11].mxu0 }
  0xf7   :  { %v1289_v57 = vsel %vm1161_vm15, %v1097_v43, %v1225_v53  ;;  %v1029_v59 = vmul.f32 %v1546_v45, %v1806_v36  ;;  %1321 = vst [vmem:[#allocation3 + $0x38] sm:$0xff] %v1257_v56  ;;  %v995_v0 = vmul.f32 %v1806_v36, %v562_v50  ;;  %v1027_v1 = vmul.f32 %v1806_v36, %v690_v51  ;;  %v693_v3 = vpop.f32.mrb[11].mxu1 }
  0xf8   :  { %1353 = vst [vmem:[#allocation3 + $0x138] sm:$0xff] %v1289_v57  ;;  %v1255_v62 = vsel %vm1127_vm0, %v1063_v48, %v1191_v54  ;;  %v1287_v63 = vsel %vm1159_vm1, %v1095_v49, %v1223_v55  ;;  %v1068_v4 = vadd.f32 %v1811_v38, %v997_v58  ;;  %v998_v6 = vmul.f32 %v1515_v60, %v1806_v36 }
  0xf9   :  { %1319 = vst [vmem:[#allocation3 + $0x28] sm:$0xff] %v1255_v62  ;;  %1351 = vst [vmem:[#allocation3 + $0x128] sm:$0xff] %v1287_v63  ;;  %v1100_v5 = vadd.f32 %v1811_v38, %v1029_v59  ;;  %v1030_v7 = vmul.f32 %v1547_v61, %v1806_v36  ;;  %v1066_v8 = vadd.f32 %v1811_v38, %v995_v0  ;;  %v1518_v12 = vpop.f32.mrb[12].mxu0  ;;  %v1550_v13 = vpop.f32.mrb[12].mxu1 }
  0xfa   :  { %v1098_v9 = vadd.f32 %v1811_v38, %v1027_v1  ;;  %v996_v10 = vmul.f32 %v1806_v36, %v565_v2  ;;  %v1028_v11 = vmul.f32 %v1806_v36, %v693_v3  ;;  %vm1132_vm2 = vcmp.gt.f32.partialorder %v1068_v4, 0.0  ;;  %v578_v22 = vpop.f32.mrb[13].mxu0  ;;  %v706_v23 = vpop.f32.mrb[13].mxu1 }
  0xfb   :  { %v1196_v14 = vmul.f32 0.1, %v1068_v4  ;;  %vm1164_vm3 = vcmp.gt.f32.partialorder %v1100_v5, 0.0  ;;  %v1228_v15 = vmul.f32 0.1, %v1100_v5  ;;  %vm1130_vm4 = vcmp.gt.f32.partialorder %v1066_v8, 0.0 }
  0xfc   :  { %v1194_v16 = vmul.f32 0.1, %v1066_v8  ;;  %vm1162_vm5 = vcmp.gt.f32.partialorder %v1098_v9, 0.0  ;;  %v1226_v17 = vmul.f32 0.1, %v1098_v9  ;;  %v1069_v20 = vadd.f32 %v1811_v38, %v998_v6  ;;  %v1519_v28 = vpop.f32.mrb[14].mxu0 }
  0xfd   :  { %v1260_v18 = vsel %vm1132_vm2, %v1068_v4, %v1196_v14  ;;  %v1292_v19 = vsel %vm1164_vm3, %v1100_v5, %v1228_v15  ;;  %v1101_v21 = vadd.f32 %v1811_v38, %v1030_v7  ;;  %v1067_v26 = vadd.f32 %v1811_v38, %v996_v10  ;;  %v1551_v29 = vpop.f32.mrb[14].mxu1  ;;  %v581_v40 = vpop.f32.mrb[15].mxu0 }
  0xfe   :  { %1324 = vst [vmem:[#allocation3 + $0x50] sm:$0xff] %v1260_v18  ;;  %1356 = vst [vmem:[#allocation3 + $0x150] sm:$0xff] %v1292_v19  ;;  %v1258_v24 = vsel %vm1130_vm4, %v1066_v8, %v1194_v16  ;;  %v1290_v25 = vsel %vm1162_vm5, %v1098_v9, %v1226_v17  ;;  %v1099_v27 = vadd.f32 %v1811_v38, %v1028_v11  ;;  %vm1133_vm6 = vcmp.gt.f32.partialorder %v1069_v20, 0.0  ;;  %v709_v41 = vpop.f32.mrb[15].mxu1 }
  0xff   :  { %1322 = vst [vmem:[#allocation3 + $0x40] sm:$0xff] %v1258_v24  ;;  %1354 = vst [vmem:[#allocation3 + $0x140] sm:$0xff] %v1290_v25  ;;  %v1197_v30 = vmul.f32 0.1, %v1069_v20  ;;  %vm1165_vm7 = vcmp.gt.f32.partialorder %v1101_v21, 0.0  ;;  %vm1131_vm8 = vcmp.gt.f32.partialorder %v1067_v26, 0.0  ;;  %v1001_v37 = vmul.f32 %v1518_v12, %v1806_v36 }
 0x100   :  { %v1229_v31 = vmul.f32 0.1, %v1101_v21  ;;  %v1195_v32 = vmul.f32 0.1, %v1067_v26  ;;  %vm1163_vm9 = vcmp.gt.f32.partialorder %v1099_v27, 0.0  ;;  %v1033_v39 = vmul.f32 %v1550_v13, %v1806_v36 }
 0x101   :  { %v1227_v33 = vmul.f32 0.1, %v1099_v27  ;;  %v1261_v34 = vsel %vm1133_vm6, %v1069_v20, %v1197_v30  ;;  %v999_v44 = vmul.f32 %v1806_v36, %v578_v22  ;;  %v1031_v45 = vmul.f32 %v1806_v36, %v706_v23  ;;  %v1522_v46 = vpop.f32.mrb[16].mxu0  ;;  %v1554_v47 = vpop.f32.mrb[16].mxu1 }
 0x102   :  { %v1293_v35 = vsel %vm1165_vm7, %v1101_v21, %v1229_v31  ;;  %1325 = vst [vmem:[#allocation3 + $0x58] sm:$0xff] %v1261_v34  ;;  %v1259_v42 = vsel %vm1131_vm8, %v1067_v26, %v1195_v32  ;;  %v1072_v48 = vadd.f32 %v1811_v38, %v1001_v37  ;;  %v1104_v49 = vadd.f32 %v1811_v38, %v1033_v39  ;;  %v594_v52 = vpop.f32.mrb[17].mxu0  ;;  %v722_v53 = vpop.f32.mrb[17].mxu1 }
 0x103   :  { %1357 = vst [vmem:[#allocation3 + $0x158] sm:$0xff] %v1293_v35  ;;  %v1291_v43 = vsel %vm1163_vm9, %v1099_v27, %v1227_v33  ;;  %1323 = vst [vmem:[#allocation3 + $0x48] sm:$0xff] %v1259_v42  ;;  %v1002_v50 = vmul.f32 %v1519_v28, %v1806_v36  ;;  %v1034_v51 = vmul.f32 %v1551_v29, %v1806_v36  ;;  %v1523_v58 = vpop.f32.mrb[18].mxu0  ;;  %v1555_v59 = vpop.f32.mrb[18].mxu1 }
 0x104   :  { %1355 = vst [vmem:[#allocation3 + $0x148] sm:$0xff] %v1291_v43  ;;  %v1070_v54 = vadd.f32 %v1811_v38, %v999_v44  ;;  %v1102_v55 = vadd.f32 %v1811_v38, %v1031_v45  ;;  %v1000_v56 = vmul.f32 %v1806_v36, %v581_v40  ;;  %v1032_v57 = vmul.f32 %v1806_v36, %v709_v41  ;;  %v597_v4 = vpop.f32.mrb[19].mxu0  ;;  %v725_v5 = vpop.f32.mrb[19].mxu1 }
 0x105   :  { %vm1136_vm10 = vcmp.gt.f32.partialorder %v1072_v48, 0.0  ;;  %v1200_v60 = vmul.f32 0.1, %v1072_v48  ;;  %vm1168_vm11 = vcmp.gt.f32.partialorder %v1104_v49, 0.0  ;;  %v1232_v61 = vmul.f32 0.1, %v1104_v49 }
 0x106   :  { %vm1134_vm12 = vcmp.gt.f32.partialorder %v1070_v54, 0.0  ;;  %v1198_v62 = vmul.f32 0.1, %v1070_v54  ;;  %vm1166_vm13 = vcmp.gt.f32.partialorder %v1102_v55, 0.0  ;;  %v1230_v63 = vmul.f32 0.1, %v1102_v55 }
 0x107   :  { %v1264_v0 = vsel %vm1136_vm10, %v1072_v48, %v1200_v60  ;;  %v1296_v1 = vsel %vm1168_vm11, %v1104_v49, %v1232_v61  ;;  %v1073_v2 = vadd.f32 %v1811_v38, %v1002_v50  ;;  %v1105_v3 = vadd.f32 %v1811_v38, %v1034_v51 }
 0x108   :  { %1328 = vst [vmem:[#allocation3 + $0x70] sm:$0xff] %v1264_v0  ;;  %1360 = vst [vmem:[#allocation3 + $0x170] sm:$0xff] %v1296_v1  ;;  %v1262_v6 = vsel %vm1134_vm12, %v1070_v54, %v1198_v62  ;;  %v1294_v7 = vsel %vm1166_vm13, %v1102_v55, %v1230_v63  ;;  %v1071_v8 = vadd.f32 %v1811_v38, %v1000_v56 }
 0x109   :  { %v1103_v9 = vadd.f32 %v1811_v38, %v1032_v57  ;;  %1326 = vst [vmem:[#allocation3 + $0x60] sm:$0xff] %v1262_v6  ;;  %1358 = vst [vmem:[#allocation3 + $0x160] sm:$0xff] %v1294_v7  ;;  %vm1137_vm14 = vcmp.gt.f32.partialorder %v1073_v2, 0.0  ;;  %v1201_v10 = vmul.f32 0.1, %v1073_v2  ;;  %vm1169_vm15 = vcmp.gt.f32.partialorder %v1105_v3, 0.0 }
 0x10a   :  { %v1233_v11 = vmul.f32 0.1, %v1105_v3  ;;  %vm1135_vm0 = vcmp.gt.f32.partialorder %v1071_v8, 0.0  ;;  %v1199_v12 = vmul.f32 0.1, %v1071_v8  ;;  %v1005_v16 = vmul.f32 %v1522_v46, %v1806_v36  ;;  %v1526_v18 = vpop.f32.mrb[20].mxu0 }
 0x10b   :  { %vm1167_vm1 = vcmp.gt.f32.partialorder %v1103_v9, 0.0  ;;  %v1231_v13 = vmul.f32 0.1, %v1103_v9  ;;  %v1265_v14 = vsel %vm1137_vm14, %v1073_v2, %v1201_v10  ;;  %v1037_v17 = vmul.f32 %v1554_v47, %v1806_v36  ;;  %v1558_v19 = vpop.f32.mrb[20].mxu1  ;;  %v610_v24 = vpop.f32.mrb[21].mxu0 }
 0x10c   :  { %v1297_v15 = vsel %vm1169_vm15, %v1105_v3, %v1233_v11  ;;  %1329 = vst [vmem:[#allocation3 + $0x78] sm:$0xff] %v1265_v14  ;;  %v1263_v20 = vsel %vm1135_vm0, %v1071_v8, %v1199_v12  ;;  %v1003_v22 = vmul.f32 %v1806_v36, %v594_v52  ;;  %v1035_v23 = vmul.f32 %v1806_v36, %v722_v53  ;;  %v738_v25 = vpop.f32.mrb[21].mxu1  ;;  %v1527_v30 = vpop.f32.mrb[22].mxu0 }
 0x10d   :  { %1361 = vst [vmem:[#allocation3 + $0x178] sm:$0xff] %v1297_v15  ;;  %v1295_v21 = vsel %vm1167_vm1, %v1103_v9, %v1231_v13  ;;  %1327 = vst [vmem:[#allocation3 + $0x68] sm:$0xff] %v1263_v20  ;;  %v1076_v26 = vadd.f32 %v1811_v38, %v1005_v16  ;;  %v1108_v27 = vadd.f32 %v1811_v38, %v1037_v17  ;;  %v1559_v31 = vpop.f32.mrb[22].mxu1  ;;  %v613_v37 = vpop.f32.mrb[23].mxu0 }
 0x10e   :  { %1359 = vst [vmem:[#allocation3 + $0x168] sm:$0xff] %v1295_v21  ;;  %v1006_v28 = vmul.f32 %v1523_v58, %v1806_v36  ;;  %v1038_v29 = vmul.f32 %v1555_v59, %v1806_v36  ;;  %v1074_v32 = vadd.f32 %v1811_v38, %v1003_v22  ;;  %v1106_v33 = vadd.f32 %v1811_v38, %v1035_v23  ;;  %v741_v39 = vpop.f32.mrb[23].mxu1 }
 0x10f   :  { %v1004_v34 = vmul.f32 %v1806_v36, %v597_v4  ;;  %v1036_v35 = vmul.f32 %v1806_v36, %v725_v5  ;;  %vm1140_vm2 = vcmp.gt.f32.partialorder %v1076_v26, 0.0  ;;  %v1204_v40 = vmul.f32 0.1, %v1076_v26 }
 0x110   :  { %vm1172_vm3 = vcmp.gt.f32.partialorder %v1108_v27, 0.0  ;;  %v1236_v41 = vmul.f32 0.1, %v1108_v27  ;;  %vm1138_vm4 = vcmp.gt.f32.partialorder %v1074_v32, 0.0  ;;  %v1202_v42 = vmul.f32 0.1, %v1074_v32 }
 0x111   :  { %vm1170_vm5 = vcmp.gt.f32.partialorder %v1106_v33, 0.0  ;;  %v1234_v43 = vmul.f32 0.1, %v1106_v33  ;;  %v1268_v44 = vsel %vm1140_vm2, %v1076_v26, %v1204_v40  ;;  %v1077_v46 = vadd.f32 %v1811_v38, %v1006_v28  ;;  %v1893_v52 = vpop.f32.mrb[24].mxu0  ;;  %v1895_v53 = vpop.f32.mrb[24].mxu1 }
 0x112   :  { %v1300_v45 = vsel %vm1172_vm3, %v1108_v27, %v1236_v41  ;;  %v1109_v47 = vadd.f32 %v1811_v38, %v1038_v29  ;;  %1332 = vst [vmem:[#allocation3 + $0x90] sm:$0xff] %v1268_v44  ;;  %v1266_v48 = vsel %vm1138_vm4, %v1074_v32, %v1202_v42  ;;  %v1075_v50 = vadd.f32 %v1811_v38, %v1004_v34  ;;  %v1899_v62 = vpop.f32.mrb[25].mxu0  ;;  %v1901_v63 = vpop.f32.mrb[25].mxu1 }
 0x113   :  { %1364 = vst [vmem:[#allocation3 + $0x190] sm:$0xff] %v1300_v45  ;;  %v1298_v49 = vsel %vm1170_vm5, %v1106_v33, %v1234_v43  ;;  %v1107_v51 = vadd.f32 %v1811_v38, %v1036_v35  ;;  %1330 = vst [vmem:[#allocation3 + $0x80] sm:$0xff] %v1266_v48  ;;  %vm1141_vm6 = vcmp.gt.f32.partialorder %v1077_v46, 0.0  ;;  %v1205_v54 = vmul.f32 0.1, %v1077_v46  ;;  %v1905_v4 = vpop.f32.mrb[26].mxu0 }
 0x114   :  { %1362 = vst [vmem:[#allocation3 + $0x180] sm:$0xff] %v1298_v49  ;;  %vm1173_vm7 = vcmp.gt.f32.partialorder %v1109_v47, 0.0  ;;  %v1237_v55 = vmul.f32 0.1, %v1109_v47  ;;  %vm1139_vm8 = vcmp.gt.f32.partialorder %v1075_v50, 0.0  ;;  %v1009_v60 = vmul.f32 %v1526_v18, %v1806_v36  ;;  %v1907_v5 = vpop.f32.mrb[26].mxu1 }
 0x115   :  { %v1203_v56 = vmul.f32 0.1, %v1075_v50  ;;  %vm1171_vm9 = vcmp.gt.f32.partialorder %v1107_v51, 0.0  ;;  %v1235_v57 = vmul.f32 0.1, %v1107_v51  ;;  %v1269_v58 = vsel %vm1141_vm6, %v1077_v46, %v1205_v54  ;;  %v629_v10 = vpop.f32.mrb[27].mxu0 }
 0x116   :  { %v1301_v59 = vsel %vm1173_vm7, %v1109_v47, %v1237_v55  ;;  %v1041_v61 = vmul.f32 %v1558_v19, %v1806_v36  ;;  %1333 = vst [vmem:[#allocation3 + $0x98] sm:$0xff] %v1269_v58  ;;  %v1007_v2 = vmul.f32 %v1806_v36, %v610_v24  ;;  %v1039_v3 = vmul.f32 %v1806_v36, %v738_v25  ;;  %v757_v11 = vpop.f32.mrb[27].mxu1 }
 0x117   :  { %1365 = vst [vmem:[#allocation3 + $0x198] sm:$0xff] %v1301_v59  ;;  %v1267_v0 = vsel %vm1139_vm8, %v1075_v50, %v1203_v56  ;;  %v1299_v1 = vsel %vm1171_vm9, %v1107_v51, %v1235_v57  ;;  %v1080_v6 = vadd.f32 %v1811_v38, %v1009_v60  ;;  %v1010_v8 = vmul.f32 %v1527_v30, %v1806_v36 }
 0x118   :  { %1331 = vst [vmem:[#allocation3 + $0x88] sm:$0xff] %v1267_v0  ;;  %1363 = vst [vmem:[#allocation3 + $0x188] sm:$0xff] %v1299_v1  ;;  %v1112_v7 = vadd.f32 %v1811_v38, %v1041_v61  ;;  %v1042_v9 = vmul.f32 %v1559_v31, %v1806_v36  ;;  %v1078_v12 = vadd.f32 %v1811_v38, %v1007_v2 }
 0x119   :  { %v1110_v13 = vadd.f32 %v1811_v38, %v1039_v3  ;;  %v1008_v14 = vmul.f32 %v1806_v36, %v613_v37  ;;  %v1040_v15 = vmul.f32 %v1806_v36, %v741_v39  ;;  %vm1144_vm10 = vcmp.gt.f32.partialorder %v1080_v6, 0.0  ;;  %v1919_v24 = vpop.f32.mrb[28].mxu0  ;;  %v1921_v25 = vpop.f32.mrb[28].mxu1 }
 0x11a   :  { %v1208_v16 = vmul.f32 0.1, %v1080_v6  ;;  %vm1176_vm11 = vcmp.gt.f32.partialorder %v1112_v7, 0.0  ;;  %v1240_v17 = vmul.f32 0.1, %v1112_v7  ;;  %vm1142_vm12 = vcmp.gt.f32.partialorder %v1078_v12, 0.0 }
 0x11b   :  { %v1206_v18 = vmul.f32 0.1, %v1078_v12  ;;  %vm1174_vm13 = vcmp.gt.f32.partialorder %v1110_v13, 0.0  ;;  %v1238_v19 = vmul.f32 0.1, %v1110_v13  ;;  %v1081_v22 = vadd.f32 %v1811_v38, %v1010_v8  ;;  %v1925_v30 = vpop.f32.mrb[29].mxu0 }
 0x11c   :  { %v1272_v20 = vsel %vm1144_vm10, %v1080_v6, %v1208_v16  ;;  %v1304_v21 = vsel %vm1176_vm11, %v1112_v7, %v1240_v17  ;;  %v1113_v23 = vadd.f32 %v1811_v38, %v1042_v9  ;;  %v1079_v28 = vadd.f32 %v1811_v38, %v1008_v14  ;;  %v1927_v31 = vpop.f32.mrb[29].mxu1  ;;  %v1535_v42 = vpop.f32.mrb[30].mxu0 }
 0x11d   :  { %1336 = vst [vmem:[#allocation3 + $0xb0] sm:$0xff] %v1272_v20  ;;  %1368 = vst [vmem:[#allocation3 + $0x1b0] sm:$0xff] %v1304_v21  ;;  %v1270_v26 = vsel %vm1142_vm12, %v1078_v12, %v1206_v18  ;;  %v1302_v27 = vsel %vm1174_vm13, %v1110_v13, %v1238_v19  ;;  %v1111_v29 = vadd.f32 %v1811_v38, %v1040_v15  ;;  %vm1145_vm14 = vcmp.gt.f32.partialorder %v1081_v22, 0.0  ;;  %v1567_v43 = vpop.f32.mrb[30].mxu1  ;;  %v645_v48 = vpop.f32.mrb[31].mxu0 }
 0x11e   :  { %1334 = vst [vmem:[#allocation3 + $0xa0] sm:$0xff] %v1270_v26  ;;  %1366 = vst [vmem:[#allocation3 + $0x1a0] sm:$0xff] %v1302_v27  ;;  %v1209_v32 = vmul.f32 0.1, %v1081_v22  ;;  %vm1177_vm15 = vcmp.gt.f32.partialorder %v1113_v23, 0.0  ;;  %vm1143_vm0 = vcmp.gt.f32.partialorder %v1079_v28, 0.0  ;;  %v1013_v40 = vmul.f32 %v1893_v52, %v1806_v36 }
 0x11f   :  { %v1241_v33 = vmul.f32 0.1, %v1113_v23  ;;  %v1207_v34 = vmul.f32 0.1, %v1079_v28  ;;  %vm1175_vm1 = vcmp.gt.f32.partialorder %v1111_v29, 0.0  ;;  %v1045_v41 = vmul.f32 %v1895_v53, %v1806_v36  ;;  %v773_v49 = vpop.f32.mrb[31].mxu1 }
 0x120   :  { %v1239_v35 = vmul.f32 0.1, %v1111_v29  ;;  %v1273_v37 = vsel %vm1145_vm14, %v1081_v22, %v1209_v32  ;;  %v1011_v46 = vmul.f32 %v1806_v36, %v1899_v62  ;;  %v1043_v47 = vmul.f32 %v1806_v36, %v1901_v63 }
 0x121   :  { %v1305_v39 = vsel %vm1177_vm15, %v1113_v23, %v1241_v33  ;;  %1337 = vst [vmem:[#allocation3 + $0xb8] sm:$0xff] %v1273_v37  ;;  %v1271_v44 = vsel %vm1143_vm0, %v1079_v28, %v1207_v34  ;;  %v1084_v50 = vadd.f32 %v1811_v38, %v1013_v40  ;;  %v1116_v51 = vadd.f32 %v1811_v38, %v1045_v41 }
 0x122   :  { %1369 = vst [vmem:[#allocation3 + $0x1b8] sm:$0xff] %v1305_v39  ;;  %v1303_v45 = vsel %vm1175_vm1, %v1111_v29, %v1239_v35  ;;  %1335 = vst [vmem:[#allocation3 + $0xa8] sm:$0xff] %v1271_v44  ;;  %v1014_v52 = vmul.f32 %v1905_v4, %v1806_v36  ;;  %v1046_v53 = vmul.f32 %v1907_v5, %v1806_v36 }
 0x123   :  { %1367 = vst [vmem:[#allocation3 + $0x1a8] sm:$0xff] %v1303_v45  ;;  %v1082_v54 = vadd.f32 %v1811_v38, %v1011_v46  ;;  %v1114_v55 = vadd.f32 %v1811_v38, %v1043_v47  ;;  %v1012_v56 = vmul.f32 %v1806_v36, %v629_v10  ;;  %v1044_v57 = vmul.f32 %v1806_v36, %v757_v11 }
 0x124   :  { %vm1148_vm2 = vcmp.gt.f32.partialorder %v1084_v50, 0.0  ;;  %v1212_v58 = vmul.f32 0.1, %v1084_v50  ;;  %vm1180_vm3 = vcmp.gt.f32.partialorder %v1116_v51, 0.0  ;;  %v1244_v59 = vmul.f32 0.1, %v1116_v51 }
 0x125   :  { %vm1146_vm4 = vcmp.gt.f32.partialorder %v1082_v54, 0.0  ;;  %v1210_v60 = vmul.f32 0.1, %v1082_v54  ;;  %vm1178_vm5 = vcmp.gt.f32.partialorder %v1114_v55, 0.0  ;;  %v1242_v61 = vmul.f32 0.1, %v1114_v55 }
 0x126   :  { %v1276_v62 = vsel %vm1148_vm2, %v1084_v50, %v1212_v58  ;;  %v1308_v63 = vsel %vm1180_vm3, %v1116_v51, %v1244_v59  ;;  %v1085_v0 = vadd.f32 %v1811_v38, %v1014_v52  ;;  %v1117_v1 = vadd.f32 %v1811_v38, %v1046_v53 }
 0x127   :  { %1340 = vst [vmem:[#allocation3 + $0xd0] sm:$0xff] %v1276_v62  ;;  %1372 = vst [vmem:[#allocation3 + $0x1d0] sm:$0xff] %v1308_v63  ;;  %v1274_v2 = vsel %vm1146_vm4, %v1082_v54, %v1210_v60  ;;  %v1306_v3 = vsel %vm1178_vm5, %v1114_v55, %v1242_v61  ;;  %v1083_v4 = vadd.f32 %v1811_v38, %v1012_v56 }
 0x128   :  { %v1115_v5 = vadd.f32 %v1811_v38, %v1044_v57  ;;  %1338 = vst [vmem:[#allocation3 + $0xc0] sm:$0xff] %v1274_v2  ;;  %1370 = vst [vmem:[#allocation3 + $0x1c0] sm:$0xff] %v1306_v3  ;;  %vm1149_vm6 = vcmp.gt.f32.partialorder %v1085_v0, 0.0  ;;  %v1213_v6 = vmul.f32 0.1, %v1085_v0  ;;  %vm1181_vm7 = vcmp.gt.f32.partialorder %v1117_v1, 0.0 }
 0x129   :  { %v1245_v7 = vmul.f32 0.1, %v1117_v1  ;;  %vm1147_vm8 = vcmp.gt.f32.partialorder %v1083_v4, 0.0  ;;  %v1211_v8 = vmul.f32 0.1, %v1083_v4  ;;  %v1017_v12 = vmul.f32 %v1919_v24, %v1806_v36 }
 0x12a   :  { %vm1179_vm9 = vcmp.gt.f32.partialorder %v1115_v5, 0.0  ;;  %v1243_v9 = vmul.f32 0.1, %v1115_v5  ;;  %v1277_v10 = vsel %vm1149_vm6, %v1085_v0, %v1213_v6  ;;  %v1049_v13 = vmul.f32 %v1921_v25, %v1806_v36 }
 0x12b   :  { %v1309_v11 = vsel %vm1181_vm7, %v1117_v1, %v1245_v7  ;;  %1341 = vst [vmem:[#allocation3 + $0xd8] sm:$0xff] %v1277_v10  ;;  %v1275_v14 = vsel %vm1147_vm8, %v1083_v4, %v1211_v8  ;;  %v1015_v16 = vmul.f32 %v1806_v36, %v1925_v30  ;;  %v1047_v17 = vmul.f32 %v1806_v36, %v1927_v31 }
 0x12c   :  { %1373 = vst [vmem:[#allocation3 + $0x1d8] sm:$0xff] %v1309_v11  ;;  %v1307_v15 = vsel %vm1179_vm9, %v1115_v5, %v1243_v9  ;;  %1339 = vst [vmem:[#allocation3 + $0xc8] sm:$0xff] %v1275_v14  ;;  %v1088_v18 = vadd.f32 %v1811_v38, %v1017_v12  ;;  %v1120_v19 = vadd.f32 %v1811_v38, %v1049_v13 }
 0x12d   :  { %1371 = vst [vmem:[#allocation3 + $0x1c8] sm:$0xff] %v1307_v15  ;;  %v1018_v20 = vmul.f32 %v1535_v42, %v1806_v36  ;;  %v1050_v21 = vmul.f32 %v1567_v43, %v1806_v36  ;;  %v1086_v22 = vadd.f32 %v1811_v38, %v1015_v16  ;;  %v1118_v23 = vadd.f32 %v1811_v38, %v1047_v17 }
 0x12e   :  { %v1016_v24 = vmul.f32 %v1806_v36, %v645_v48  ;;  %v1048_v25 = vmul.f32 %v1806_v36, %v773_v49  ;;  %vm1152_vm10 = vcmp.gt.f32.partialorder %v1088_v18, 0.0  ;;  %v1216_v26 = vmul.f32 0.1, %v1088_v18 }
 0x12f   :  { %vm1184_vm11 = vcmp.gt.f32.partialorder %v1120_v19, 0.0  ;;  %v1248_v27 = vmul.f32 0.1, %v1120_v19  ;;  %vm1150_vm12 = vcmp.gt.f32.partialorder %v1086_v22, 0.0  ;;  %v1214_v28 = vmul.f32 0.1, %v1086_v22 }
 0x130   :  { %vm1182_vm13 = vcmp.gt.f32.partialorder %v1118_v23, 0.0  ;;  %v1246_v29 = vmul.f32 0.1, %v1118_v23  ;;  %v1280_v30 = vsel %vm1152_vm10, %v1088_v18, %v1216_v26  ;;  %v1089_v32 = vadd.f32 %v1811_v38, %v1018_v20 }
 0x131   :  { %v1312_v31 = vsel %vm1184_vm11, %v1120_v19, %v1248_v27  ;;  %v1121_v33 = vadd.f32 %v1811_v38, %v1050_v21  ;;  %1344 = vst [vmem:[#allocation3 + $0xf0] sm:$0xff] %v1280_v30  ;;  %v1278_v34 = vsel %vm1150_vm12, %v1086_v22, %v1214_v28  ;;  %v1087_v35 = vadd.f32 %v1811_v38, %v1016_v24 }
 0x132   :  { %1376 = vst [vmem:[#allocation3 + $0x1f0] sm:$0xff] %v1312_v31  ;;  %v1310_v36 = vsel %vm1182_vm13, %v1118_v23, %v1246_v29  ;;  %v1119_v37 = vadd.f32 %v1811_v38, %v1048_v25  ;;  %1342 = vst [vmem:[#allocation3 + $0xe0] sm:$0xff] %v1278_v34  ;;  %vm1153_vm14 = vcmp.gt.f32.partialorder %v1089_v32, 0.0  ;;  %v1217_v39 = vmul.f32 0.1, %v1089_v32 }
 0x133   :  { %1374 = vst [vmem:[#allocation3 + $0x1e0] sm:$0xff] %v1310_v36  ;;  %vm1185_vm15 = vcmp.gt.f32.partialorder %v1121_v33, 0.0  ;;  %v1249_v40 = vmul.f32 0.1, %v1121_v33  ;;  %vm1151_vm0 = vcmp.gt.f32.partialorder %v1087_v35, 0.0 }
 0x134   :  { %v1215_v41 = vmul.f32 0.1, %v1087_v35  ;;  %vm1183_vm1 = vcmp.gt.f32.partialorder %v1119_v37, 0.0  ;;  %v1247_v42 = vmul.f32 0.1, %v1119_v37  ;;  %v1281_v43 = vsel %vm1153_vm14, %v1089_v32, %v1217_v39 }
 0x135   :  { %v1313_v44 = vsel %vm1185_vm15, %v1121_v33, %v1249_v40  ;;  %1345 = vst [vmem:[#allocation3 + $0xf8] sm:$0xff] %v1281_v43 }
 0x136   :  { %1377 = vst [vmem:[#allocation3 + $0x1f8] sm:$0xff] %v1313_v44  ;;  %v1279_v45 = vsel %vm1151_vm0, %v1087_v35, %v1215_v41  ;;  %v1311_v46 = vsel %vm1183_vm1, %v1119_v37, %v1247_v42 }
 0x137   :  { %1343 = vst [vmem:[#allocation3 + $0xe8] sm:$0xff] %v1279_v45  ;;  %1375 = vst [vmem:[#allocation3 + $0x1e8] sm:$0xff] %v1311_v46 }
 0x138   :  { %1625 = shalt.err (!%p1622_p4)
}
 0x139   :  { %s1626_s10 = scalar_lea.hbm %s1987_s4, 8192 }
 0x13a   :  { %p1627_p5 = scmp.ne.s32.totalorder %s1987_s4, %s1626_s10  ;;  %p1630_p6 = scmp.lt.u32.totalorder %s1626_s10, %s1987_s4 }
 0x13c   :  { %p1632_p7 = pnand %p1630_p6, %p1627_p5 }
 0x13e   :  { %1635 = shalt.err (!%p1632_p7)
}
 0x13f   :  { %s1639_s15 = smov 128   ;;  %s1640_s16 = smov 8  }
 0x140   :  { %1389 = dma.vmem_to_hbm [thread:$0]  %s1384_s2, 8192, %s1987_s4, [#allocation4], %s1639_s15, %s1639_s15, %s1640_s16  }
 0x141   :  { %1636 = dma.done.wait [#allocation4], 8192  }
 0x142   :  { %1637 = vsyncadd [#allocation4], 4294959104 }
 0x143   :  { %1393 = vsyncpa [#allocation4], 1 }

</bundles_post_ra>
